<compile_context>
chip_gen: v6e
topology: v6e:2x2x1
jax: 0.10.0
libtpu: 0.0.40
codegen_flags: <defaults>
</compile_context>

<pallas_src>
import functools

import jax
import jax.numpy as jnp
from jax.experimental import pallas as pl
from jax.experimental.pallas import tpu as pltpu

H1 = 128          # fc1 width
H2 = 64           # fc2 width
N_CLASSES = 4     # fc3 width


def _round_up(x, m):
    return ((x + m - 1) // m) * m


def gest_mlp_kernel(x_ref, w1_ref, b1_ref, w2_ref, b2_ref, w3_ref, b3_ref, o_ref):
    # One (tile_b, F) batch tile per grid step; weights/biases are VMEM-resident.
    # Pure f32: MXU matmuls with f32 accumulation, bias add + ReLU on the VPU.
    x = x_ref[...]

    h1 = jnp.dot(x, w1_ref[...], preferred_element_type=jnp.float32) + b1_ref[...]
    h1 = jnp.maximum(h1, 0.0)

    h2 = jnp.dot(h1, w2_ref[...], preferred_element_type=jnp.float32) + b2_ref[...]
    h2 = jnp.maximum(h2, 0.0)

    out = jnp.dot(h2, w3_ref[...], preferred_element_type=jnp.float32) + b3_ref[...]
    o_ref[...] = out.astype(o_ref.dtype)


@functools.partial(jax.jit, static_argnames=("tile_b",))
def gest_classifier_forward(x, params, tile_b=2048):
    """Forward pass of GestClassifier.

    x: [B, input_size] float32
    params: dict with w1 [F,128], b1 [1,128], w2 [128,64], b2 [1,64],
            w3 [64,4], b3 [1,4]  (weights already transposed vs. PyTorch's [out,in]).
    Returns logits [B, 4] float32.
    """
    B, F = x.shape

    # Pad the batch only to a sublane multiple (no-op when B % 8 == 0).
    b8 = _round_up(B, 8)
    if b8 != B:
        x = jnp.pad(x, ((0, b8 - B), (0, 0)))

    # Batch tile: big enough to amortize the ~0.35us per-step overhead, never larger than
    # the (padded) batch, and capped so the grid has >= 2 steps when possible (v7x has
    # 2 TensorCores; the "parallel" axis only helps with >= 2 steps).
    tile_b = _round_up(max(8, min(tile_b, b8)), 8)
    half_cap = _round_up(-(-b8 // 2), 8)
    tile_b = min(tile_b, max(8, half_cap))
    grid = (pl.cdiv(b8, tile_b),)

    resident = lambda a: pl.BlockSpec(a.shape, lambda i: (0,) * a.ndim)

    w1, b1 = params["w1"], params["b1"]
    w2, b2 = params["w2"], params["b2"]
    w3, b3 = params["w3"], params["b3"]

    flops = 2 * b8 * (F * H1 + H1 * H2 + H2 * N_CLASSES)
    bytes_accessed = (b8 * F * 4                                   # x read
                      + b8 * N_CLASSES * 4                         # logits write
                      + (F * H1 + H1 * H2 + H2 * N_CLASSES) * 4    # weights
                      + (H1 + H2 + N_CLASSES) * 4)                 # biases

    out = pl.pallas_call(
        gest_mlp_kernel,
        out_shape=jax.ShapeDtypeStruct((b8, N_CLASSES), jnp.float32),
        grid=grid,
        in_specs=[
            pl.BlockSpec((tile_b, F), lambda i: (i, 0)),   # x: streamed per tile
            resident(w1), resident(b1),                    # weights/biases: VMEM-resident
            resident(w2), resident(b2),
            resident(w3), resident(b3),
        ],
        out_specs=pl.BlockSpec((tile_b, N_CLASSES), lambda i: (i, 0)),
        compiler_params=pltpu.CompilerParams(
            dimension_semantics=("parallel",)),            # megacore sharding on v7x
        cost_estimate=pl.CostEstimate(
            flops=flops, transcendentals=0, bytes_accessed=bytes_accessed),
    )(x, w1, b1, w2, b2, w3, b3)

    return out[:B]


def init_params(key, input_size):
    """Deterministic init mimicking nn.Linear (uniform +/-1/sqrt(fan_in))."""
    def linear(k, fan_in, fan_out):
        kw, kb = jax.random.split(k)
        bound = 1.0 / jnp.sqrt(float(fan_in))
        # Stored as [in, out] (transposed relative to PyTorch's [out, in]).
        w = jax.random.uniform(kw, (fan_in, fan_out), jnp.float32, -bound, bound)
        b = jax.random.uniform(kb, (1, fan_out), jnp.float32, -bound, bound)
        return w, b

    k1, k2, k3 = jax.random.split(key, 3)
    w1, b1 = linear(k1, input_size, H1)
    w2, b2 = linear(k2, H1, H2)
    w3, b3 = linear(k3, H2, N_CLASSES)
    return {"w1": w1, "b1": b1, "w2": w2, "b2": b2, "w3": w3, "b3": b3}


def reference_forward_f32(x, p):
    hp = jax.lax.Precision.HIGHEST
    h1 = jnp.maximum(jnp.dot(x, p["w1"], precision=hp) + p["b1"], 0.0)
    h2 = jnp.maximum(jnp.dot(h1, p["w2"], precision=hp) + p["b2"], 0.0)
    return jnp.dot(h2, p["w3"], precision=hp) + p["b3"]


if __name__ == "__main__":
    key = jax.random.PRNGKey(0)
    kx, kp = jax.random.split(key)

    # Keypoint feature vector (e.g. 17 keypoints * (x, y) = 34 floats), small batch.
    batch = 8
    input_size = 34

    x = jax.random.normal(kx, (batch, input_size), dtype=jnp.float32)
    params = init_params(kp, input_size)

    logits = gest_classifier_forward(x, params)
    logits = jax.block_until_ready(logits)

    assert logits.shape == (batch, N_CLASSES)
    assert bool(jnp.all(jnp.isfinite(logits)))

    # Check against the pure-f32 PyTorch-equivalent reference (kernel is now all-f32;
    # small tolerance covers MXU f32-pass rounding differences vs XLA).
    ref_f32 = reference_forward_f32(x, params)
    assert jnp.allclose(logits, ref_f32, atol=2e-2, rtol=2e-2)

    print("KERNEL_OK")
</pallas_src>

<mosaic_0001>
module attributes {stable_mosaic.version = 11 : i64} {
  func.func @gest_mlp_kernel(%arg0: i32, %arg1: memref<8x34xf32, #tpu.memory_space<vmem>>, %arg2: memref<34x128xf32, #tpu.memory_space<vmem>>, %arg3: memref<1x128xf32, #tpu.memory_space<vmem>>, %arg4: memref<128x64xf32, #tpu.memory_space<vmem>>, %arg5: memref<1x64xf32, #tpu.memory_space<vmem>>, %arg6: memref<64x4xf32, #tpu.memory_space<vmem>>, %arg7: memref<1x4xf32, #tpu.memory_space<vmem>>, %arg8: memref<8x4xf32, #tpu.memory_space<vmem>>) attributes {dimension_semantics = [#tpu.dimension_semantics<parallel>], iteration_bounds = array<i64: 1>, scalar_prefetch = 0 : i64, scratch_operands = 0 : i64, tpu.core_type = #tpu.core_type<tc>, window_params = [{transform_indices = @transform_0, window_bounds = array<i64: 8, 34>}, {pipeline_mode = #tpu.pipeline_mode<synchronous>, transform_indices = @transform_1, window_bounds = array<i64: 34, 128>}, {pipeline_mode = #tpu.pipeline_mode<synchronous>, transform_indices = @transform_2, window_bounds = array<i64: 1, 128>}, {pipeline_mode = #tpu.pipeline_mode<synchronous>, transform_indices = @transform_3, window_bounds = array<i64: 128, 64>}, {pipeline_mode = #tpu.pipeline_mode<synchronous>, transform_indices = @transform_4, window_bounds = array<i64: 1, 64>}, {pipeline_mode = #tpu.pipeline_mode<synchronous>, transform_indices = @transform_5, window_bounds = array<i64: 64, 4>}, {pipeline_mode = #tpu.pipeline_mode<synchronous>, transform_indices = @transform_6, window_bounds = array<i64: 1, 4>}, {transform_indices = @transform_7, window_bounds = array<i64: 8, 4>}]} {
    %c0 = arith.constant 0 : index
    %c0_0 = arith.constant 0 : index
    %0 = vector.load %arg1[%c0, %c0_0] : memref<8x34xf32, #tpu.memory_space<vmem>>, vector<8x34xf32>
    %c0_1 = arith.constant 0 : index
    %c0_2 = arith.constant 0 : index
    %1 = vector.load %arg2[%c0_1, %c0_2] : memref<34x128xf32, #tpu.memory_space<vmem>>, vector<34x128xf32>
    %cst = arith.constant dense<0.000000e+00> : vector<8x128xf32>
    %2 = tpu.matmul %0, %1, %cst {dimension_numbers = #tpu.dot_dimension_numbers<[1], [0], [0], [1], [0, 0, 1, 1], [], []>} : vector<8x34xf32>, vector<34x128xf32>, vector<8x128xf32> -> vector<8x128xf32>
    %c0_3 = arith.constant 0 : index
    %c0_4 = arith.constant 0 : index
    %3 = vector.load %arg3[%c0_3, %c0_4] : memref<1x128xf32, #tpu.memory_space<vmem>>, vector<1x128xf32>
    %4 = vector.broadcast %3 : vector<1x128xf32> to vector<8x128xf32>
    %5 = arith.addf %2, %4 : vector<8x128xf32>
    %cst_5 = arith.constant 0.000000e+00 : f32
    %6 = vector.broadcast %cst_5 : f32 to vector<8x128xf32>
    %7 = arith.maximumf %5, %6 : vector<8x128xf32>
    %c0_6 = arith.constant 0 : index
    %c0_7 = arith.constant 0 : index
    %8 = vector.load %arg4[%c0_6, %c0_7] : memref<128x64xf32, #tpu.memory_space<vmem>>, vector<128x64xf32>
    %cst_8 = arith.constant dense<0.000000e+00> : vector<8x64xf32>
    %9 = tpu.matmul %7, %8, %cst_8 {dimension_numbers = #tpu.dot_dimension_numbers<[1], [0], [0], [1], [0, 0, 1, 1], [], []>} : vector<8x128xf32>, vector<128x64xf32>, vector<8x64xf32> -> vector<8x64xf32>
    %c0_9 = arith.constant 0 : index
    %c0_10 = arith.constant 0 : index
    %10 = vector.load %arg5[%c0_9, %c0_10] : memref<1x64xf32, #tpu.memory_space<vmem>>, vector<1x64xf32>
    %11 = vector.broadcast %10 : vector<1x64xf32> to vector<8x64xf32>
    %12 = arith.addf %9, %11 : vector<8x64xf32>
    %cst_11 = arith.constant 0.000000e+00 : f32
    %13 = vector.broadcast %cst_11 : f32 to vector<8x64xf32>
    %14 = arith.maximumf %12, %13 : vector<8x64xf32>
    %c0_12 = arith.constant 0 : index
    %c0_13 = arith.constant 0 : index
    %15 = vector.load %arg6[%c0_12, %c0_13] : memref<64x4xf32, #tpu.memory_space<vmem>>, vector<64x4xf32>
    %cst_14 = arith.constant dense<0.000000e+00> : vector<8x4xf32>
    %16 = tpu.matmul %14, %15, %cst_14 {dimension_numbers = #tpu.dot_dimension_numbers<[1], [0], [0], [1], [0, 0, 1, 1], [], []>} : vector<8x64xf32>, vector<64x4xf32>, vector<8x4xf32> -> vector<8x4xf32>
    %c0_15 = arith.constant 0 : index
    %c0_16 = arith.constant 0 : index
    %17 = vector.load %arg7[%c0_15, %c0_16] : memref<1x4xf32, #tpu.memory_space<vmem>>, vector<1x4xf32>
    %18 = vector.broadcast %17 : vector<1x4xf32> to vector<8x4xf32>
    %19 = arith.addf %16, %18 : vector<8x4xf32>
    %c0_17 = arith.constant 0 : index
    %c0_18 = arith.constant 0 : index
    %20 = vector.load %arg8[%c0_17, %c0_18] : memref<8x4xf32, #tpu.memory_space<vmem>>, vector<8x4xf32>
    tpu.vector_store %arg8[%c0_17, %c0_18], %19 {strides = array<i32>} : memref<8x4xf32, #tpu.memory_space<vmem>>, vector<8x4xf32>,
    return
  }
  func.func @transform_0(%arg0: i32) -> (i32, i32) {
    %c0_i32 = arith.constant 0 : i32
    %c0_i32_0 = arith.constant 0 : i32
    return %arg0, %c0_i32 : i32, i32
  }
  func.func @transform_1(%arg0: i32) -> (i32, i32) {
    %c0_i32 = arith.constant 0 : i32
    %c0_i32_0 = arith.constant 0 : i32
    %c0_i32_1 = arith.constant 0 : i32
    return %c0_i32, %c0_i32_0 : i32, i32
  }
  func.func @transform_2(%arg0: i32) -> (i32, i32) {
    %c0_i32 = arith.constant 0 : i32
    %c0_i32_0 = arith.constant 0 : i32
    %c0_i32_1 = arith.constant 0 : i32
    return %c0_i32, %c0_i32_0 : i32, i32
  }
  func.func @transform_3(%arg0: i32) -> (i32, i32) {
    %c0_i32 = arith.constant 0 : i32
    %c0_i32_0 = arith.constant 0 : i32
    %c0_i32_1 = arith.constant 0 : i32
    return %c0_i32, %c0_i32_0 : i32, i32
  }
  func.func @transform_4(%arg0: i32) -> (i32, i32) {
    %c0_i32 = arith.constant 0 : i32
    %c0_i32_0 = arith.constant 0 : i32
    %c0_i32_1 = arith.constant 0 : i32
    return %c0_i32, %c0_i32_0 : i32, i32
  }
  func.func @transform_5(%arg0: i32) -> (i32, i32) {
    %c0_i32 = arith.constant 0 : i32
    %c0_i32_0 = arith.constant 0 : i32
    %c0_i32_1 = arith.constant 0 : i32
    return %c0_i32, %c0_i32_0 : i32, i32
  }
  func.func @transform_6(%arg0: i32) -> (i32, i32) {
    %c0_i32 = arith.constant 0 : i32
    %c0_i32_0 = arith.constant 0 : i32
    %c0_i32_1 = arith.constant 0 : i32
    return %c0_i32, %c0_i32_0 : i32, i32
  }
  func.func @transform_7(%arg0: i32) -> (i32, i32) {
    %c0_i32 = arith.constant 0 : i32
    %c0_i32_0 = arith.constant 0 : i32
    return %arg0, %c0_i32 : i32, i32
  }
}

</mosaic_0001>

<bundles_post_ra>
// kernel: gest_classifier_forward.1
= control target key start
LH: loop header
LB: loop body
LE: loop exit
PB: predicated region body
PF: predicated region fallthrough
CT: control target
= control target key end

     0   :  { %vm43_vm0 = vcmask 1041408   ;;  %v414_v0 = vmov 0.0   ;;  %vm415_vm1 = vmmov 0   ;;  %vm39_vm2 = vcmask 277504   ;;  %s593_s1 = inlined_call_operand.vmem [shape: f32[34,128], index: 1, kind: input, shape index: {}]   ;;  %s594_s3 = inlined_call_operand.vmem [shape: f32[128,64], index: 3, kind: input, shape index: {}]   ;;  %s595_s0 = inlined_call_operand.vmem [shape: f32[8,34], index: 0, kind: input, shape index: {}]   ;;  %s596_s5 = inlined_call_operand.vmem [shape: f32[64,4], index: 5, kind: input, shape index: {}]   ;;  %s597_s2 = inlined_call_operand.vmem [shape: f32[1,128], index: 2, kind: input, shape index: {}]   ;;  %s598_s4 = inlined_call_operand.vmem [shape: f32[1,64], index: 4, kind: input, shape index: {}]   ;;  %s599_s6 = inlined_call_operand.vmem [shape: f32[1,4], index: 6, kind: input, shape index: {}]   ;;  %s600_s7 = inlined_call_operand.vmem [shape: f32[8,4], index: 7, kind: output, shape index: {}]  }
   0x1   :  { %345 = vmatprep.subr.mxu0 %v414_v0  ;;  %v31_v1 = vld [vmem:[%s593_s1 + $0x20] sm:$0x3]  ;;  %v30_v2 = vld [vmem:[%s593_s1 + $0x18] sm:$0xff]  ;;  %355 = vmatprep.mubr.msk.f32.mxu0 %vm415_vm1, %v414_v0  ;;  %v29_v3 = vld [vmem:[%s593_s1 + $0x10] sm:$0xff]  ;;  %vm227_vm3 = vcmask 523264   ;;  %vm301_vm4 = vcmask 31744  }
   0x2   :  { %346 = vmatpush3.msk.msra.mxu0 %vm43_vm0, %v31_v1  ;;  %358 = vmatprep.subr.mxu1 %v414_v0  ;;  %v133_v4 = vld [vmem:[%s594_s3 + $0x78] sm:$0xff]  ;;  %v132_v5 = vld [vmem:[%s594_s3 + $0x70] sm:$0xff]  ;;  %v28_v6 = vld [vmem:[%s593_s1 + $0x8] sm:$0xff] }
   0x3   :  { %347 = vmatprep.subr.mxu0 %v414_v0  ;;  %390 = vmatprep.mubr.msk.f32.mxu1 %vm415_vm1, %v414_v0  ;;  %v131_v7 = vld [vmem:[%s594_s3 + $0x68] sm:$0xff]  ;;  %v27_v8 = vld [vmem:[%s593_s1] sm:$0xff]  ;;  %v129_v11 = vld [vmem:[%s594_s3 + $0x58] sm:$0xff] }
   0x4   :  { %348 = vmatpush3.msra.mxu0 %v30_v2  ;;  %359 = vmatpush3.msra.mxu1 %v133_v4  ;;  %v130_v9 = vld [vmem:[%s594_s3 + $0x60] sm:$0xff]  ;;  %v128_v12 = vld [vmem:[%s594_s3 + $0x50] sm:$0xff]  ;;  %v127_v13 = vld [vmem:[%s594_s3 + $0x48] sm:$0xff] }
   0x5   :  { %349 = vmatprep.subr.mxu0 %v414_v0  ;;  %360 = vmatprep.subr.mxu1 %v414_v0  ;;  %v26_v10 = vld [vmem:[%s595_s0] sm:$0xff]  ;;  %v125_v15 = vld [vmem:[%s594_s3 + $0x38] sm:$0xff]  ;;  %v124_v16 = vld [vmem:[%s594_s3 + $0x30] sm:$0xff] }
   0x6   :  { %350 = vmatpush3.msra.mxu0 %v29_v3  ;;  %361 = vmatpush3.msra.mxu1 %v132_v5  ;;  %v126_v14 = vld [vmem:[%s594_s3 + $0x40] sm:$0xff]  ;;  %v123_v17 = vld [vmem:[%s594_s3 + $0x28] sm:$0xff]  ;;  %v121_v19 = vld [vmem:[%s594_s3 + $0x18] sm:$0xff] }
   0x7   :  { %351 = vmatprep.subr.mxu0 %v414_v0  ;;  %362 = vmatprep.subr.mxu1 %v414_v0  ;;  %v122_v18 = vld [vmem:[%s594_s3 + $0x20] sm:$0xff]  ;;  %v120_v20 = vld [vmem:[%s594_s3 + $0x10] sm:$0xff]  ;;  %v119_v21 = vld [vmem:[%s594_s3 + $0x8] sm:$0xff] }
   0x8   :  { %352 = vmatpush3.msra.mxu0 %v28_v6  ;;  %363 = vmatpush3.msra.mxu1 %v131_v7  ;;  %v118_v22 = vld [vmem:[%s594_s3] sm:$0xff]  ;;  %v219_v23 = vld [vmem:[%s596_s5 + $0x38] sm:$0xff]  ;;  %v218_v24 = vld [vmem:[%s596_s5 + $0x30] sm:$0xff] }
   0x9   :  { %353 = vmatprep.subr.mxu0 %v414_v0  ;;  %364 = vmatprep.subr.mxu1 %v414_v0  ;;  %v217_v25 = vld [vmem:[%s596_s5 + $0x28] sm:$0xff]  ;;  %v216_v26 = vld [vmem:[%s596_s5 + $0x20] sm:$0xff]  ;;  %v215_v27 = vld [vmem:[%s596_s5 + $0x18] sm:$0xff] }
   0xa   :  { %354 = vmatpush3.msra.mxu0 %v27_v8  ;;  %365 = vmatpush3.msra.mxu1 %v130_v9  ;;  %v307_v28 = vld [vmem:[%s597_s2] ss:$0 sm:$0xff]  ;;  %v214_v33 = vld [vmem:[%s596_s5 + $0x10] sm:$0xff]  ;;  %v213_v34 = vld [vmem:[%s596_s5 + $0x8] sm:$0xff] }
   0xb   :  { %356 = vmatmul.mubr.msk.f32.vlgmr.msra.gmra.mxu0 %vm39_vm2, %v26_v10  ;;  %366 = vmatprep.subr.mxu1 %v414_v0  ;;  %v212_v35 = vld [vmem:[%s596_s5] sm:$0xff] }
   0xc   :  { %367 = vmatpush3.msra.mxu1 %v129_v11  ;;  %393 = vmatprep.subr.mxu0 %v414_v0  ;;  %v310_v36 = vld [vmem:[%s598_s4] ss:$0 sm:$0xff] }
   0xd   :  { %368 = vmatprep.subr.mxu1 %v414_v0  ;;  %409 = vmatprep.mubr.msk.f32.mxu0 %vm415_vm1, %v414_v0  ;;  %v311_v41 = vld [vmem:[%s599_s6] ss:$0 sm:$0xff] }
   0xe   :  { %369 = vmatpush3.msra.mxu1 %v128_v12  ;;  %394 = vmatpush3.msra.mxu0 %v219_v23 }
   0xf   :  { %370 = vmatprep.subr.mxu1 %v414_v0  ;;  %395 = vmatprep.subr.mxu0 %v414_v0 }
  0x10   :  { %371 = vmatpush3.msra.mxu1 %v127_v13  ;;  %396 = vmatpush3.msra.mxu0 %v218_v24 }
  0x11   :  { %372 = vmatprep.subr.mxu1 %v414_v0  ;;  %397 = vmatprep.subr.mxu0 %v414_v0 }
  0x12   :  { %373 = vmatpush3.msra.mxu1 %v126_v14  ;;  %398 = vmatpush3.msra.mxu0 %v217_v25 }
  0x13   :  { %374 = vmatprep.subr.mxu1 %v414_v0  ;;  %399 = vmatprep.subr.mxu0 %v414_v0 }
  0x14   :  { %375 = vmatpush3.msra.mxu1 %v125_v15  ;;  %400 = vmatpush3.msra.mxu0 %v216_v26 }
  0x15   :  { %376 = vmatprep.subr.mxu1 %v414_v0  ;;  %401 = vmatprep.subr.mxu0 %v414_v0 }
  0x16   :  { %377 = vmatpush3.msra.mxu1 %v124_v16  ;;  %402 = vmatpush3.msra.mxu0 %v215_v27 }
  0x17   :  { %378 = vmatprep.subr.mxu1 %v414_v0  ;;  %403 = vmatprep.subr.mxu0 %v414_v0 }
  0x18   :  { %379 = vmatpush3.msra.mxu1 %v123_v17  ;;  %404 = vmatpush3.msra.mxu0 %v214_v33 }
  0x19   :  { %380 = vmatprep.subr.mxu1 %v414_v0  ;;  %405 = vmatprep.subr.mxu0 %v414_v0 }
  0x1a   :  { %381 = vmatpush3.msra.mxu1 %v122_v18  ;;  %406 = vmatpush3.msra.mxu0 %v213_v34 }
  0x1b   :  { %382 = vmatprep.subr.mxu1 %v414_v0  ;;  %407 = vmatprep.subr.mxu0 %v414_v0 }
  0x1c   :  { %383 = vmatpush3.msra.mxu1 %v121_v19  ;;  %408 = vmatpush3.msra.mxu0 %v212_v35 }
  0x1d   :  { %384 = vmatprep.subr.mxu1 %v414_v0 }
  0x1e   :  { %385 = vmatpush3.msra.mxu1 %v120_v20 }
  0x1f   :  { %386 = vmatprep.subr.mxu1 %v414_v0 }
  0x20   :  { %387 = vmatpush3.msra.mxu1 %v119_v21 }
  0x21   :  { %388 = vmatprep.subr.mxu1 %v414_v0 }
  0x22   :  { %389 = vmatpush3.msra.mxu1 %v118_v22 }
  0xcb   :  { %v113_v29 = vpop.f32.mrf.mxu0 }
  0xcc   :  { %v114_v30 = vadd.f32 %v307_v28, %v113_v29 }
  0xcd   :  { %v357_v31 = vpop.f32.mrf.mxu0 }
  0xce   :  { %v117_v32 = vmax.f32 %v114_v30, 0.0 }
  0xd0   :  { %391 = vmatmul.mubr.f32.vlgmr.msra.gmra.mxu1 %v117_v32 }
 0x190   :  { %v207_v37 = vpop.f32.mrf.mxu1 }
 0x191   :  { %v208_v38 = vadd.f32 %v310_v36, %v207_v37 }
 0x192   :  { %v392_v39 = vpop.f32.mrf.mxu1 }
 0x193   :  { %v211_v40 = vmax.f32 %v208_v38, 0.0 }
 0x195   :  { %410 = vmatmul.mubr.msk.f32.vlgmr.msra.gmra.mxu0 %vm227_vm3, %v211_v40 }
 0x255   :  { %v297_v42 = vpop.f32.mrf.mxu0 }
 0x256   :  { %v298_v43 = vadd.f32 %v311_v41, %v297_v42 }
 0x257   :  { %v411_v44 = vpop.f32.mrf.mxu0 }
 0x258   :  { %302 = vst.msk [vmem:[%s600_s7] sm:$0xff] %vm301_vm4, %v298_v43 }

</bundles_post_ra>
